<compile_context>
chip_gen: v5e
topology: v5e:2x2
jax: 0.10.0
libtpu: 0.0.40
codegen_flags: <defaults>
</compile_context>

<pallas_src>
import jax
import jax.numpy as jnp
from jax.experimental import pallas as pl
from jax.experimental.pallas import tpu as pltpu


def _round_up(n: int, m: int) -> int:
    return ((n + m - 1) // m) * m


def _mlp_kernel(x_ref, w1_ref, b1_ref, w2_ref, b2_ref, o_ref):
    # Layer 1 on the MXU, batch-on-lanes:
    #   (5, 7) . (TB, 7)^T -> (5, TB)
    h = jax.lax.dot_general(
        w1_ref[...], x_ref[...],
        dimension_numbers=(((1,), (1,)), ((), ())),
        preferred_element_type=jnp.float32,
    )
    h = jnp.maximum(h + b1_ref[...], 0.0)          # (5,TB) + (5,1) lane-broadcast, ReLU
    # Layer 2 on the VPU: weighted sum of the 5 hidden rows -> (1, TB),
    # result stays in vregs until the lane-dense store.
    y = jnp.sum(h * w2_ref[...], axis=0, keepdims=True) + b2_ref[...]   # (1, TB)
    o_ref[...] = y[None]                           # (1, 1, TB) lane-dense store


def nonlinear_model_forward(x, w1, b1, w2, b2, *, block_b: int = 1024):
    """Forward pass of NonLinearModel (PyTorch nn.Linear parameter layouts).

    x : (B, 7) float32
    w1: (5, 7) float32  -- layer1.weight (out, in)
    b1: (5,)   float32  -- layer1.bias
    w2: (1, 5) float32  -- layer2.weight
    b2: (1,)   float32  -- layer2.bias
    returns (B, 1) float32
    """
    x = jnp.asarray(x, jnp.float32)
    B, F = x.shape
    assert F == 7, F

    # Batch tile: multiple of 256 (v6e/v7x MXU rows; also a multiple of 128
    # for v5e), capped at block_b.  Pad B up to a multiple of the tile so the
    # last grid step never reads/writes out of range.
    tb = min(block_b, _round_up(B, 256))
    bp = _round_up(B, tb)
    nt = bp // tb
    if bp != B:
        # TODO(synk): for very large ragged B a tail-tile row mask would avoid
        # this extra copy; padding is simplest and exact.
        x = jnp.pad(x, ((0, bp - B), (0, 0)))

    w1m = jnp.asarray(w1, jnp.float32).reshape(5, 7)   # (out, in) used directly
    b1c = jnp.asarray(b1, jnp.float32).reshape(5, 1)
    w2c = jnp.asarray(w2, jnp.float32).reshape(5, 1)   # (1,5) -> column
    b2c = jnp.asarray(b2, jnp.float32).reshape(1, 1)

    cost = pl.CostEstimate(
        flops=2 * B * (7 * 5 + 5),
        transcendentals=0,
        bytes_accessed=B * (7 * 4 + 4) + 4 * (5 * 7 + 5 + 5 + 1),
    )

    out = pl.pallas_call(
        _mlp_kernel,
        out_shape=jax.ShapeDtypeStruct((nt, 1, tb), jnp.float32),
        grid=(nt,),
        in_specs=[
            pl.BlockSpec((tb, 7), lambda i: (i, 0)),   # x tile (pipelined)
            pl.BlockSpec((5, 7), lambda i: (0, 0)),    # w1, resident
            pl.BlockSpec((5, 1), lambda i: (0, 0)),    # b1, resident
            pl.BlockSpec((5, 1), lambda i: (0, 0)),    # w2, resident
            pl.BlockSpec((1, 1), lambda i: (0, 0)),    # b2, resident
        ],
        out_specs=pl.BlockSpec((1, 1, tb), lambda i: (i, 0, 0)),
        compiler_params=pltpu.CompilerParams(
            dimension_semantics=("parallel",),         # megacore sharding on v7x
        ),
        cost_estimate=cost,
    )(x, w1m, b1c, w2c, b2c)

    # (nt, 1, tb) row-major flatten == batch order; free reshape, drop pad.
    return out.reshape(bp, 1)[:B]


def _ref_forward(x, w1, b1, w2, b2):
    h = jnp.maximum(x @ w1.T + b1, 0.0)
    return h @ w2.T + b2


if __name__ == "__main__":
    key = jax.random.PRNGKey(0)
    k_x, k_w1, k_b1, k_w2, k_b2 = jax.random.split(key, 5)

    B = 8
    x = jax.random.normal(k_x, (B, 7), dtype=jnp.float32)
    # PyTorch nn.Linear layouts: weight (out, in), bias (out,)
    w1 = jax.random.normal(k_w1, (5, 7), dtype=jnp.float32) * 0.3
    b1 = jax.random.normal(k_b1, (5,), dtype=jnp.float32) * 0.3
    w2 = jax.random.normal(k_w2, (1, 5), dtype=jnp.float32) * 0.3
    b2 = jax.random.normal(k_b2, (1,), dtype=jnp.float32) * 0.3

    out = nonlinear_model_forward(x, w1, b1, w2, b2)
    out = jax.block_until_ready(out)

    ref = _ref_forward(x, w1, b1, w2, b2)
    assert out.shape == (B, 1), out.shape
    assert jnp.allclose(out, ref, atol=1e-5, rtol=1e-5), "mismatch vs JAX reference"

    print("KERNEL_OK")
</pallas_src>

<mosaic_0001>
module attributes {stable_mosaic.version = 11 : i64} {
  func.func @_mlp_kernel(%arg0: i32, %arg1: memref<256x7xf32, #tpu.memory_space<vmem>>, %arg2: memref<5x7xf32, #tpu.memory_space<vmem>>, %arg3: memref<5x1xf32, #tpu.memory_space<vmem>>, %arg4: memref<5x1xf32, #tpu.memory_space<vmem>>, %arg5: memref<1x1xf32, #tpu.memory_space<vmem>>, %arg6: memref<1x1x256xf32, #tpu.memory_space<vmem>>) attributes {dimension_semantics = [#tpu.dimension_semantics<parallel>], iteration_bounds = array<i64: 1>, scalar_prefetch = 0 : i64, scratch_operands = 0 : i64, tpu.core_type = #tpu.core_type<tc>, window_params = [{transform_indices = @transform_0, window_bounds = array<i64: 256, 7>}, {pipeline_mode = #tpu.pipeline_mode<synchronous>, transform_indices = @transform_1, window_bounds = array<i64: 5, 7>}, {pipeline_mode = #tpu.pipeline_mode<synchronous>, transform_indices = @transform_2, window_bounds = array<i64: 5, 1>}, {pipeline_mode = #tpu.pipeline_mode<synchronous>, transform_indices = @transform_3, window_bounds = array<i64: 5, 1>}, {pipeline_mode = #tpu.pipeline_mode<synchronous>, transform_indices = @transform_4, window_bounds = array<i64: 1, 1>}, {transform_indices = @transform_5, window_bounds = array<i64: 1, 1, 256>}]} {
    %c0 = arith.constant 0 : index
    %c0_0 = arith.constant 0 : index
    %0 = vector.load %arg2[%c0, %c0_0] : memref<5x7xf32, #tpu.memory_space<vmem>>, vector<5x7xf32>
    %c0_1 = arith.constant 0 : index
    %c0_2 = arith.constant 0 : index
    %1 = vector.load %arg1[%c0_1, %c0_2] : memref<256x7xf32, #tpu.memory_space<vmem>>, vector<256x7xf32>
    %cst = arith.constant dense<0.000000e+00> : vector<5x256xf32>
    %2 = tpu.matmul %0, %1, %cst {dimension_numbers = #tpu.dot_dimension_numbers<[1], [1], [0], [0], [0, 0, 1, 0], [], []>} : vector<5x7xf32>, vector<256x7xf32>, vector<5x256xf32> -> vector<5x256xf32>
    %c0_3 = arith.constant 0 : index
    %c0_4 = arith.constant 0 : index
    %3 = vector.load %arg3[%c0_3, %c0_4] : memref<5x1xf32, #tpu.memory_space<vmem>>, vector<5x1xf32>
    %4 = vector.broadcast %3 : vector<5x1xf32> to vector<5x256xf32>
    %5 = arith.addf %2, %4 : vector<5x256xf32>
    %cst_5 = arith.constant 0.000000e+00 : f32
    %6 = vector.broadcast %cst_5 : f32 to vector<5x256xf32>
    %7 = arith.maximumf %5, %6 : vector<5x256xf32>
    %c0_6 = arith.constant 0 : index
    %c0_7 = arith.constant 0 : index
    %8 = vector.load %arg4[%c0_6, %c0_7] : memref<5x1xf32, #tpu.memory_space<vmem>>, vector<5x1xf32>
    %9 = vector.broadcast %8 : vector<5x1xf32> to vector<5x256xf32>
    %10 = arith.mulf %7, %9 : vector<5x256xf32>
    %cst_8 = arith.constant dense<0.000000e+00> : vector<256xf32>
    %11 = vector.multi_reduction <add>, %10, %cst_8 [0] : vector<5x256xf32> to vector<256xf32>
    %12 = vector.shape_cast %11 : vector<256xf32> to vector<1x256xf32>
    %c0_9 = arith.constant 0 : index
    %c0_10 = arith.constant 0 : index
    %13 = vector.load %arg5[%c0_9, %c0_10] : memref<1x1xf32, #tpu.memory_space<vmem>>, vector<1x1xf32>
    %14 = vector.broadcast %13 : vector<1x1xf32> to vector<1x256xf32>
    %15 = arith.addf %12, %14 : vector<1x256xf32>
    %16 = vector.shape_cast %15 : vector<1x256xf32> to vector<1x1x256xf32>
    %c0_11 = arith.constant 0 : index
    %c0_12 = arith.constant 0 : index
    %c0_13 = arith.constant 0 : index
    %17 = vector.load %arg6[%c0_11, %c0_12, %c0_13] : memref<1x1x256xf32, #tpu.memory_space<vmem>>, vector<1x1x256xf32>
    tpu.vector_store %arg6[%c0_11, %c0_12, %c0_13], %16 {strides = array<i32>} : memref<1x1x256xf32, #tpu.memory_space<vmem>>, vector<1x1x256xf32>,
    return
  }
  func.func @transform_0(%arg0: i32) -> (i32, i32) {
    %c0_i32 = arith.constant 0 : i32
    %c0_i32_0 = arith.constant 0 : i32
    return %arg0, %c0_i32 : i32, i32
  }
  func.func @transform_1(%arg0: i32) -> (i32, i32) {
    %c0_i32 = arith.constant 0 : i32
    %c0_i32_0 = arith.constant 0 : i32
    %c0_i32_1 = arith.constant 0 : i32
    return %c0_i32, %c0_i32_0 : i32, i32
  }
  func.func @transform_2(%arg0: i32) -> (i32, i32) {
    %c0_i32 = arith.constant 0 : i32
    %c0_i32_0 = arith.constant 0 : i32
    %c0_i32_1 = arith.constant 0 : i32
    return %c0_i32, %c0_i32_0 : i32, i32
  }
  func.func @transform_3(%arg0: i32) -> (i32, i32) {
    %c0_i32 = arith.constant 0 : i32
    %c0_i32_0 = arith.constant 0 : i32
    %c0_i32_1 = arith.constant 0 : i32
    return %c0_i32, %c0_i32_0 : i32, i32
  }
  func.func @transform_4(%arg0: i32) -> (i32, i32) {
    %c0_i32 = arith.constant 0 : i32
    %c0_i32_0 = arith.constant 0 : i32
    %c0_i32_1 = arith.constant 0 : i32
    return %c0_i32, %c0_i32_0 : i32, i32
  }
  func.func @transform_5(%arg0: i32) -> (i32, i32, i32) {
    %c0_i32 = arith.constant 0 : i32
    %c0_i32_0 = arith.constant 0 : i32
    %c0_i32_1 = arith.constant 0 : i32
    return %arg0, %c0_i32, %c0_i32_0 : i32, i32, i32
  }
}

</mosaic_0001>

<bundles_post_ra>
// kernel: tpu_custom_call.1
= control target key start
LH: loop header
LB: loop body
LE: loop exit
PB: predicated region body
PF: predicated region fallthrough
CT: control target
= control target key end

     0   :  { %s504_s0 = inlined_call_operand.vmem [shape: f32[256,7], index: 0, kind: input, shape index: {}]   ;;  %s505_s1 = inlined_call_operand.vmem [shape: f32[5,7], index: 1, kind: input, shape index: {}]   ;;  %s506_s2 = inlined_call_operand.vmem [shape: f32[5,1], index: 2, kind: input, shape index: {}]   ;;  %s507_s3 = inlined_call_operand.vmem [shape: f32[5,1], index: 3, kind: input, shape index: {}]   ;;  %s508_s4 = inlined_call_operand.<no memory space> [shape: f32[1,1], index: 4, kind: input, shape index: {}]   ;;  %s509_s5 = inlined_call_operand.hbm [shape: f32[1,1,256], index: 5, kind: output, shape index: {}]  }
   0x1   :  { %v10_v0 = vstv %s508_s4 }
   0x2   :  { %11 = vst [vmem:[#allocation2] sm:$0x1] %v10_v0 }
   0x3   :  { %v39_v1 = vld [vmem:[%s504_s0 + $0x78] sm:$0xff]  ;;  %vm62_vm0 = vcmask 56320   ;;  %v38_v3 = vld [vmem:[%s504_s0 + $0x70] sm:$0xff]  ;;  %v37_v5 = vld [vmem:[%s504_s0 + $0x68] sm:$0xff] }
   0x4   :  { %v55_v2 = vld [vmem:[%s504_s0 + $0xf8] sm:$0xff]  ;;  %263 = vmatpush.xpose.msk.msra.mxu0 %vm62_vm0, %v39_v1  ;;  %v54_v4 = vld [vmem:[%s504_s0 + $0xf0] sm:$0xff]  ;;  %v53_v6 = vld [vmem:[%s504_s0 + $0xe8] sm:$0xff] }
   0x5   :  { %280 = vmatpush.xpose.msk.msra.mxu1 %vm62_vm0, %v55_v2 }
   0x8   :  { %264 = vmatpush.xpose.msk.msra.mxu0 %vm62_vm0, %v38_v3 }
   0x9   :  { %281 = vmatpush.xpose.msk.msra.mxu1 %vm62_vm0, %v54_v4 }
   0xa   :  { %12 = vsyncpa [#allocation4], 0  ;;  %v36_v7 = vld [vmem:[%s504_s0 + $0x60] sm:$0xff]  ;;  %v35_v9 = vld [vmem:[%s504_s0 + $0x58] sm:$0xff]  ;;  %v327_v20 = vmov 0   ;;  %vm212_vm1 = vcmask 1044480   ;;  %v242_v0 = vlaneseq }
   0xb   :  { %v52_v8 = vld [vmem:[%s504_s0 + $0xe0] sm:$0xff]  ;;  %v51_v10 = vld [vmem:[%s504_s0 + $0xd8] sm:$0xff]  ;;  %v34_v11 = vld [vmem:[%s504_s0 + $0x50] sm:$0xff]  ;;  %299 = vset.pattern.permute.xlu0 %v327_v20  ;;  %300 = vset.pattern.permute.xlu1 %v327_v20  ;;  %s254_s11 = sshll.u32 %s509_s5, 4  ;;  %vm239_vm2 = vcmask 1040384   ;;  %s255_s11 = int_to_ptr.hbm [resolvable:$true] %s254_s11 }
   0xc   :  { %265 = vmatpush.xpose.msk.msra.mxu0 %vm62_vm0, %v37_v5  ;;  %v50_v12 = vld [vmem:[%s504_s0 + $0xd0] sm:$0xff]  ;;  %v33_v13 = vld [vmem:[%s504_s0 + $0x48] sm:$0xff]  ;;  %v32_v15 = vld [vmem:[%s504_s0 + $0x40] sm:$0xff]  ;;  %vm244_vm3 = vcmp.lt.s32.totalorder %v242_v0, 256 }
   0xd   :  { %282 = vmatpush.xpose.msk.msra.mxu1 %vm62_vm0, %v53_v6  ;;  %v49_v14 = vld [vmem:[%s504_s0 + $0xc8] sm:$0xff]  ;;  %v48_v16 = vld [vmem:[%s504_s0 + $0xc0] sm:$0xff]  ;;  %v31_v18 = vld [vmem:[%s504_s0 + $0x38] sm:$0xff] }
   0xe   :  { %v56_v17 = vld [vmem:[%s506_s2] sm:$0x1f]  ;;  %v47_v19 = vld [vmem:[%s504_s0 + $0xb8] sm:$0xff]  ;;  %v30_v22 = vld [vmem:[%s504_s0 + $0x30] sm:$0xff] }
   0xf   :  { %59 = vperm.xlu0 %299, %v56_v17   ;;  %v227_v21 = vld [vmem:[#allocation2] sm:$0x1]  ;;  %v46_v23 = vld [vmem:[%s504_s0 + $0xb0] sm:$0xff]  ;;  %v29_v25 = vld [vmem:[%s504_s0 + $0x28] sm:$0xff] }
  0x10   :  { %266 = vmatpush.xpose.msk.msra.mxu0 %vm62_vm0, %v36_v7  ;;  %230 = vperm.xlu1 %300, %v227_v21   ;;  %v204_v24 = vld [vmem:[%s507_s3] sm:$0x1f]  ;;  %v45_v26 = vld [vmem:[%s504_s0 + $0xa8] sm:$0xff]  ;;  %v27_v29 = vld [vmem:[%s504_s0 + $0x18] sm:$0xff] }
  0x11   :  { %283 = vmatpush.xpose.msk.msra.mxu1 %vm62_vm0, %v52_v8  ;;  %v28_v27 = vld [vmem:[%s504_s0 + $0x20] sm:$0xff]  ;;  %v43_v30 = vld [vmem:[%s504_s0 + $0x98] sm:$0xff]  ;;  %v26_v31 = vld [vmem:[%s504_s0 + $0x10] sm:$0xff] }
  0x12   :  { %v44_v28 = vld [vmem:[%s504_s0 + $0xa0] sm:$0xff]  ;;  %v42_v32 = vld [vmem:[%s504_s0 + $0x90] sm:$0xff]  ;;  %v25_v33 = vld [vmem:[%s504_s0 + $0x8] sm:$0xff] }
  0x13   :  { %v41_v34 = vld [vmem:[%s504_s0 + $0x88] sm:$0xff]  ;;  %v24_v35 = vld [vmem:[%s504_s0] sm:$0xff] }
  0x14   :  { %267 = vmatpush.xpose.msk.msra.mxu0 %vm62_vm0, %v35_v9  ;;  %v40_v36 = vld [vmem:[%s504_s0 + $0x80] sm:$0xff]  ;;  %s328_s0 = smov [#allocation3]  }
  0x15   :  { %284 = vmatpush.xpose.msk.msra.mxu1 %vm62_vm0, %v51_v10  ;;  %v23_v37 = vld [vmem:[%s505_s1] sm:$0x1f]  ;;  %s252_s1 = sshll.u32 %s328_s0, 4  ;;  %s253_s1 = int_to_ptr.vmem [resolvable:$true] %s252_s1 }
  0x17   :  { %207 = vperm.xlu0 %299, %v204_v24  }
  0x18   :  { %268 = vmatpush.xpose.msk.msra.mxu0 %vm62_vm0, %v34_v11 }
  0x19   :  { %285 = vmatpush.xpose.msk.msra.mxu1 %vm62_vm0, %v50_v12 }
  0x1c   :  { %269 = vmatpush.xpose.msk.msra.mxu0 %vm62_vm0, %v33_v13 }
  0x1d   :  { %286 = vmatpush.xpose.msk.msra.mxu1 %vm62_vm0, %v49_v14 }
  0x20   :  { %270 = vmatpush.xpose.msk.msra.mxu0 %vm62_vm0, %v32_v15 }
  0x21   :  { %287 = vmatpush.xpose.msk.msra.mxu1 %vm62_vm0, %v48_v16 }
  0x24   :  { %271 = vmatpush.xpose.msk.msra.mxu0 %vm62_vm0, %v31_v18 }
  0x25   :  { %288 = vmatpush.xpose.msk.msra.mxu1 %vm62_vm0, %v47_v19 }
  0x28   :  { %272 = vmatpush.xpose.msk.msra.mxu0 %vm62_vm0, %v30_v22 }
  0x29   :  { %289 = vmatpush.xpose.msk.msra.mxu1 %vm62_vm0, %v46_v23 }
  0x2c   :  { %273 = vmatpush.xpose.msk.msra.mxu0 %vm62_vm0, %v29_v25 }
  0x2d   :  { %290 = vmatpush.xpose.msk.msra.mxu1 %vm62_vm0, %v45_v26 }
  0x30   :  { %274 = vmatpush.xpose.msk.msra.mxu0 %vm62_vm0, %v28_v27 }
  0x31   :  { %291 = vmatpush.xpose.msk.msra.mxu1 %vm62_vm0, %v44_v28 }
  0x34   :  { %275 = vmatpush.xpose.msk.msra.mxu0 %vm62_vm0, %v27_v29 }
  0x35   :  { %292 = vmatpush.xpose.msk.msra.mxu1 %vm62_vm0, %v43_v30 }
  0x38   :  { %276 = vmatpush.xpose.msk.msra.mxu0 %vm62_vm0, %v26_v31 }
  0x39   :  { %293 = vmatpush.xpose.msk.msra.mxu1 %vm62_vm0, %v42_v32 }
  0x3c   :  { %277 = vmatpush.xpose.msk.msra.mxu0 %vm62_vm0, %v25_v33 }
  0x3d   :  { %294 = vmatpush.xpose.msk.msra.mxu1 %vm62_vm0, %v41_v34 }
  0x40   :  { %278 = vmatpush.xpose.msk.msra.mxu0 %vm62_vm0, %v24_v35 }
  0x41   :  { %295 = vmatpush.xpose.msk.msra.mxu1 %vm62_vm0, %v40_v36 }
  0x43   :  { %279 = vmatmul.msk.f32.vlgmr.msra.gmra.mxu0 %vm62_vm0, %v23_v37 }
  0x44   :  { %296 = vmatmul.msk.f32.vlgmr.msra.gmra.mxu1 %vm62_vm0, %v23_v37 }
  0x81   :  { %v60_v38 = vpop.permute.xlu0 %59 }
  0x82   :  { %v231_v56 = vpop.permute.xlu1 %230 }
  0x83   :  { %v233_v61 = vperm.slane %v231_v56, 0 }
  0x89   :  { %v208_v45 = vpop.permute.xlu0 %207 }
  0xc0   :  { %v179_v39 = vpop.f32.mrf.mxu0 }
  0xc1   :  { %v199_v40 = vpop.f32.mrf.mxu1  ;;  %v180_v41 = vadd.f32 %v179_v39, %v60_v38 }
  0xc2   :  { %v200_v42 = vadd.f32 %v199_v40, %v60_v38 }
  0xc3   :  { %v202_v43 = vmax.f32 %v180_v41, 0.0 }
  0xc4   :  { %v203_v44 = vmax.f32 %v200_v42, 0.0 }
  0xc5   :  { %v210_v46 = vmul.f32 %v208_v45, %v202_v43 }
  0xc6   :  { %v211_v47 = vmul.f32 %v208_v45, %v203_v44 }
  0xc7   :  { %v213_v48 = vsel %vm212_vm1, %v210_v46, 0.0 }
  0xc8   :  { %v220_v49 = vsel %vm212_vm1, %v211_v47, 0.0  ;;  %v214_v50 = vrot.slane %v213_v48, 4 }
  0xc9   :  { %v221_v51 = vrot.slane %v220_v49, 4 }
  0xca   :  { %v215_v52 = vadd.f32 %v214_v50, %v213_v48 }
  0xcb   :  { %v222_v53 = vadd.f32 %v221_v51, %v220_v49 }
  0xcc   :  { %v216_v54 = vrot.slane %v215_v52, 2 }
  0xcd   :  { %v223_v55 = vrot.slane %v222_v53, 2 }
  0xce   :  { %v217_v57 = vadd.f32 %v216_v54, %v215_v52 }
  0xcf   :  { %v224_v58 = vadd.f32 %v223_v55, %v222_v53 }
  0xd0   :  { %v218_v59 = vrot.slane %v217_v57, 1 }
  0xd1   :  { %v225_v60 = vrot.slane %v224_v58, 1 }
  0xd2   :  { %v219_v62 = vadd.f32 %v218_v59, %v217_v57 }
  0xd3   :  { %v226_v63 = vadd.f32 %v225_v60, %v224_v58 }
  0xd4   :  { %v234_v2 = vadd.f32 %v233_v61, %v219_v62 }
  0xd5   :  { %v235_v1 = vadd.f32 %v233_v61, %v226_v63 }
  0xd7   :  { %v238_v3 = vrot.slane %v235_v1, 7 }
  0xd9   :  { %v240_v4 = vsel %vm239_vm2, %v234_v2, %v238_v3 }
  0xda   :  { %246 = vst.msk [vmem:[#allocation3] sm:$0x3] %vm244_vm3, %v240_v4 }
  0xdb   :  { %257 = dma.vmem_to_hbm [thread:$0]  %s253_s1, 32, %s255_s11, [#allocation4]  }
  0xdc   :  { %325 = dma.done.wait [#allocation4], 32  }
  0xdd   :  { %326 = vsyncadd [#allocation4], 4294967264 }
  0xde   :  { %262 = vsyncpa [#allocation4], 1 }

</bundles_post_ra>
